<compile_context>
chip_gen: v7x
topology: tpu7x:2x2x1
jax: 0.10.0
libtpu: 0.0.40
codegen_flags: <defaults>
</compile_context>

<pallas_src>
import functools

import jax
import jax.numpy as jnp
import numpy as np
from jax.experimental import pallas as pl
from jax.experimental.pallas import tpu as pltpu

# ----------------------------- model config ---------------------------------
VOCAB_SIZE = 50
EMBED_DIM = 32          # embedding_dim (E)
NUM_CLASSES = 4
KERNEL_SIZES = (3, 4, 5)
NUM_FILTERS = 100       # num_filters (F)
SEQ_LEN = 8             # L
BATCH = 2

F_PAD = 128             # lane-dense filter count (100 -> 128)
C_PAD = 128             # lane-dense class count  (4 -> 128)


# ------------------------------ Pallas kernel --------------------------------
def _textcnn_kernel(emb_ref,                       # (B, L, E)        bf16
                    w3_ref, b3_ref,                # (3E, F_PAD) bf16, (1, F_PAD) f32
                    w4_ref, b4_ref,                # (4E, F_PAD) bf16, (1, F_PAD) f32
                    w5_ref, b5_ref,                # (5E, F_PAD) bf16, (1, F_PAD) f32
                    wfc_ref, bfc_ref,              # (3*F_PAD, C_PAD) bf16, (1, C_PAD) f32
                    out_ref,                       # (B, C_PAD)       f32
                    *, kernel_sizes, seq_len, batch):
    # Per-batch (L, E) rows; batch is a tiny static constant so this unrolls.
    emb_rows = [emb_ref[b] for b in range(batch)]              # each (L, E) bf16

    def conv_relu_maxpool(w_ref, b_ref, ks):
        t = seq_len - ks + 1                                   # valid conv length
        # im2col: build one (B*t, ks*E) operand -> a single MXU matmul per conv.
        rows = []
        for b in range(batch):
            taps = [emb_rows[b][k:k + t, :] for k in range(ks)]    # (t, E) each
            rows.append(jnp.concatenate(taps, axis=1))             # (t, ks*E)
        x = jnp.concatenate(rows, axis=0)                          # (B*t, ks*E)
        acc = jnp.dot(x, w_ref[...], preferred_element_type=jnp.float32)
        acc = jnp.maximum(acc + b_ref[...], 0.0)                   # bias + ReLU (f32)
        # max-over-time per batch row (XLU sublane reduce) -> (B, F_PAD)
        pooled = [jnp.max(acc[b * t:(b + 1) * t, :], axis=0, keepdims=True)
                  for b in range(batch)]
        return jnp.concatenate(pooled, axis=0)

    pooled = [conv_relu_maxpool(w_ref, b_ref, ks)
              for (w_ref, b_ref), ks in zip(
                  ((w3_ref, b3_ref), (w4_ref, b4_ref), (w5_ref, b5_ref)),
                  kernel_sizes)]
    feat = jnp.concatenate(pooled, axis=1)                         # (B, 3*F_PAD) f32

    # TODO(synk): nn.Dropout(0.5) is identity in eval mode; not applied here.
    logits = jnp.dot(feat.astype(wfc_ref.dtype), wfc_ref[...],
                     preferred_element_type=jnp.float32) + bfc_ref[...]
    out_ref[...] = logits.astype(out_ref.dtype)                    # (B, C_PAD)


# ------------------------------- wrapper --------------------------------------
def textcnn_forward(emb, w3, b3, w4, b4, w5, b5, wfc, bfc):
    """emb: (B, L, E) f32; w{ks}: (ks, E, F); b{ks}: (1, F); wfc: (3F, C); bfc: (1, C).
    Returns (B, C) float32 logits."""
    B, L, E = emb.shape
    C = wfc.shape[1]
    n_conv = len(KERNEL_SIZES)

    def pad_conv(w, b):
        ks = w.shape[0]
        w2 = w.reshape(ks * E, NUM_FILTERS)                          # im2col weight
        w2 = jnp.pad(w2, ((0, 0), (0, F_PAD - NUM_FILTERS))).astype(jnp.bfloat16)
        b2 = jnp.pad(b, ((0, 0), (0, F_PAD - NUM_FILTERS))).astype(jnp.float32)
        return w2, b2

    w3p, b3p = pad_conv(w3, b3)
    w4p, b4p = pad_conv(w4, b4)
    w5p, b5p = pad_conv(w5, b5)

    # FC weight: regroup rows per conv to the padded F_PAD stride and zero-pad
    # the class dim to a lane-dense 128 (padded rows/cols are zero => no-op).
    wfcp = jnp.pad(wfc.reshape(n_conv, NUM_FILTERS, C),
                   ((0, 0), (0, F_PAD - NUM_FILTERS), (0, C_PAD - C)))
    wfcp = wfcp.reshape(n_conv * F_PAD, C_PAD).astype(jnp.bfloat16)
    bfcp = jnp.pad(bfc, ((0, 0), (0, C_PAD - C))).astype(jnp.float32)

    kernel = functools.partial(_textcnn_kernel, kernel_sizes=KERNEL_SIZES,
                               seq_len=L, batch=B)
    vmem = pl.BlockSpec(memory_space=pltpu.MemorySpace.VMEM)

    out = pl.pallas_call(
        kernel,
        out_shape=jax.ShapeDtypeStruct((B, C_PAD), jnp.float32),
        in_specs=[vmem] * 9,
        out_specs=vmem,
    )(emb.astype(jnp.bfloat16), w3p, b3p, w4p, b4p, w5p, b5p, wfcp, bfcp)

    return out[:, :C]


# -------------------------- deterministic params ------------------------------
def init_params(key):
    ks = jax.random.split(key, 9)
    emb_table = jax.random.normal(ks[0], (VOCAB_SIZE, EMBED_DIM), jnp.float32)
    params = {"emb_table": emb_table}
    # conv weights: PyTorch Conv2d weight is (F, 1, ks, E); stored here as (ks, E, F)
    for i, k_sz in enumerate(KERNEL_SIZES):
        fan_in = k_sz * EMBED_DIM
        bound = 1.0 / np.sqrt(fan_in)
        params[f"w{k_sz}"] = jax.random.uniform(
            ks[1 + 2 * i], (k_sz, EMBED_DIM, NUM_FILTERS), jnp.float32,
            -bound, bound)
        params[f"b{k_sz}"] = jax.random.uniform(
            ks[2 + 2 * i], (1, NUM_FILTERS), jnp.float32, -bound, bound)
    fan_in_fc = len(KERNEL_SIZES) * NUM_FILTERS
    bound = 1.0 / np.sqrt(fan_in_fc)
    params["wfc"] = jax.random.uniform(
        ks[7], (fan_in_fc, NUM_CLASSES), jnp.float32, -bound, bound)
    params["bfc"] = jax.random.uniform(
        ks[8], (1, NUM_CLASSES), jnp.float32, -bound, bound)
    return params


# ------------------------------ pure-JAX reference ----------------------------
def reference_forward(tokens, p):
    emb = p["emb_table"][tokens]                               # (B, L, E), f32
    pooled = []
    for k_sz in KERNEL_SIZES:
        t = SEQ_LEN - k_sz + 1
        acc = jnp.zeros((emb.shape[0], t, NUM_FILTERS), jnp.float32)
        for k in range(k_sz):
            acc = acc + jnp.einsum("ble,ef->blf", emb[:, k:k + t, :],
                                   p[f"w{k_sz}"][k])
        acc = jax.nn.relu(acc + p[f"b{k_sz}"][None])
        pooled.append(jnp.max(acc, axis=1))                    # (B, F)
    feat = jnp.concatenate(pooled, axis=1)                     # (B, 3F)
    return feat @ p["wfc"] + p["bfc"]                          # (B, C)


# ----------------------------------- main -------------------------------------
if __name__ == "__main__":
    key = jax.random.PRNGKey(0)
    pkey, tkey = jax.random.split(key)
    params = init_params(pkey)

    tokens = jax.random.randint(tkey, (BATCH, SEQ_LEN), 0, VOCAB_SIZE,
                                dtype=jnp.int32)               # x: (B, L)

    # glue: embedding lookup (nn.Embedding) + unsqueeze handled in plain JAX
    emb = params["emb_table"][tokens].astype(jnp.float32)      # (B, L, E)

    out = textcnn_forward(
        emb,
        params["w3"], params["b3"],
        params["w4"], params["b4"],
        params["w5"], params["b5"],
        params["wfc"], params["bfc"],
    )
    out = jax.block_until_ready(out)

    ref = jax.block_until_ready(reference_forward(tokens, params))
    # bf16 MXU operands (f32 accumulation) => loosened tolerance vs f32 reference.
    np.testing.assert_allclose(np.asarray(out), np.asarray(ref),
                               rtol=2e-2, atol=2e-2)
    print("KERNEL_OK")
</pallas_src>

<mosaic_0001>
module attributes {stable_mosaic.version = 11 : i64} {
  func.func @_textcnn_kernel(%arg0: memref<2x8x32xbf16, #tpu.memory_space<vmem>>, %arg1: memref<96x128xbf16, #tpu.memory_space<vmem>>, %arg2: memref<1x128xf32, #tpu.memory_space<vmem>>, %arg3: memref<128x128xbf16, #tpu.memory_space<vmem>>, %arg4: memref<1x128xf32, #tpu.memory_space<vmem>>, %arg5: memref<160x128xbf16, #tpu.memory_space<vmem>>, %arg6: memref<1x128xf32, #tpu.memory_space<vmem>>, %arg7: memref<384x128xbf16, #tpu.memory_space<vmem>>, %arg8: memref<1x128xf32, #tpu.memory_space<vmem>>, %arg9: memref<2x128xf32, #tpu.memory_space<vmem>>) attributes {dimension_semantics = [], scalar_prefetch = 0 : i64, scratch_operands = 0 : i64, tpu.core_type = #tpu.core_type<tc>} {
    %c0 = arith.constant 0 : index
    %c0_0 = arith.constant 0 : index
    %c0_1 = arith.constant 0 : index
    %0 = vector.load %arg0[%c0, %c0_0, %c0_1] : memref<2x8x32xbf16, #tpu.memory_space<vmem>>, vector<1x8x32xbf16>
    %1 = vector.shape_cast %0 : vector<1x8x32xbf16> to vector<8x32xbf16>
    %c1 = arith.constant 1 : index
    %c0_2 = arith.constant 0 : index
    %c0_3 = arith.constant 0 : index
    %2 = vector.load %arg0[%c1, %c0_2, %c0_3] : memref<2x8x32xbf16, #tpu.memory_space<vmem>>, vector<1x8x32xbf16>
    %3 = vector.shape_cast %2 : vector<1x8x32xbf16> to vector<8x32xbf16>
    %4 = vector.extract_strided_slice %1 {offsets = [0, 0], sizes = [6, 32], strides = [1, 1]} : vector<8x32xbf16> to vector<6x32xbf16>
    %5 = vector.extract_strided_slice %1 {offsets = [1, 0], sizes = [6, 32], strides = [1, 1]} : vector<8x32xbf16> to vector<6x32xbf16>
    %6 = vector.extract_strided_slice %1 {offsets = [2, 0], sizes = [6, 32], strides = [1, 1]} : vector<8x32xbf16> to vector<6x32xbf16>
    %7 = tpu.concatenate %4, %5, %6 in 1 : vector<6x32xbf16>, vector<6x32xbf16>, vector<6x32xbf16> -> vector<6x96xbf16>
    %8 = vector.extract_strided_slice %3 {offsets = [0, 0], sizes = [6, 32], strides = [1, 1]} : vector<8x32xbf16> to vector<6x32xbf16>
    %9 = vector.extract_strided_slice %3 {offsets = [1, 0], sizes = [6, 32], strides = [1, 1]} : vector<8x32xbf16> to vector<6x32xbf16>
    %10 = vector.extract_strided_slice %3 {offsets = [2, 0], sizes = [6, 32], strides = [1, 1]} : vector<8x32xbf16> to vector<6x32xbf16>
    %11 = tpu.concatenate %8, %9, %10 in 1 : vector<6x32xbf16>, vector<6x32xbf16>, vector<6x32xbf16> -> vector<6x96xbf16>
    %12 = tpu.concatenate %7, %11 in 0 : vector<6x96xbf16>, vector<6x96xbf16> -> vector<12x96xbf16>
    %c0_4 = arith.constant 0 : index
    %c0_5 = arith.constant 0 : index
    %13 = vector.load %arg1[%c0_4, %c0_5] : memref<96x128xbf16, #tpu.memory_space<vmem>>, vector<96x128xbf16>
    %cst = arith.constant dense<0.000000e+00> : vector<12x128xf32>
    %14 = tpu.matmul %12, %13, %cst {dimension_numbers = #tpu.dot_dimension_numbers<[1], [0], [0], [1], [0, 0, 1, 1], [], []>} : vector<12x96xbf16>, vector<96x128xbf16>, vector<12x128xf32> -> vector<12x128xf32>
    %c0_6 = arith.constant 0 : index
    %c0_7 = arith.constant 0 : index
    %15 = vector.load %arg2[%c0_6, %c0_7] : memref<1x128xf32, #tpu.memory_space<vmem>>, vector<1x128xf32>
    %16 = vector.broadcast %15 : vector<1x128xf32> to vector<12x128xf32>
    %17 = arith.addf %14, %16 : vector<12x128xf32>
    %cst_8 = arith.constant 0.000000e+00 : f32
    %18 = vector.broadcast %cst_8 : f32 to vector<12x128xf32>
    %19 = arith.maximumf %17, %18 : vector<12x128xf32>
    %20 = vector.extract_strided_slice %19 {offsets = [0, 0], sizes = [6, 128], strides = [1, 1]} : vector<12x128xf32> to vector<6x128xf32>
    %cst_9 = arith.constant dense<0xFF800000> : vector<128xf32>
    %21 = vector.multi_reduction <maximumf>, %20, %cst_9 [0] : vector<6x128xf32> to vector<128xf32>
    %22 = vector.shape_cast %21 : vector<128xf32> to vector<1x128xf32>
    %23 = vector.extract_strided_slice %19 {offsets = [6, 0], sizes = [6, 128], strides = [1, 1]} : vector<12x128xf32> to vector<6x128xf32>
    %cst_10 = arith.constant dense<0xFF800000> : vector<128xf32>
    %24 = vector.multi_reduction <maximumf>, %23, %cst_10 [0] : vector<6x128xf32> to vector<128xf32>
    %25 = vector.shape_cast %24 : vector<128xf32> to vector<1x128xf32>
    %26 = tpu.concatenate %22, %25 in 0 : vector<1x128xf32>, vector<1x128xf32> -> vector<2x128xf32>
    %27 = vector.extract_strided_slice %1 {offsets = [0, 0], sizes = [5, 32], strides = [1, 1]} : vector<8x32xbf16> to vector<5x32xbf16>
    %28 = vector.extract_strided_slice %1 {offsets = [1, 0], sizes = [5, 32], strides = [1, 1]} : vector<8x32xbf16> to vector<5x32xbf16>
    %29 = vector.extract_strided_slice %1 {offsets = [2, 0], sizes = [5, 32], strides = [1, 1]} : vector<8x32xbf16> to vector<5x32xbf16>
    %30 = vector.extract_strided_slice %1 {offsets = [3, 0], sizes = [5, 32], strides = [1, 1]} : vector<8x32xbf16> to vector<5x32xbf16>
    %31 = tpu.concatenate %27, %28, %29, %30 in 1 : vector<5x32xbf16>, vector<5x32xbf16>, vector<5x32xbf16>, vector<5x32xbf16> -> vector<5x128xbf16>
    %32 = vector.extract_strided_slice %3 {offsets = [0, 0], sizes = [5, 32], strides = [1, 1]} : vector<8x32xbf16> to vector<5x32xbf16>
    %33 = vector.extract_strided_slice %3 {offsets = [1, 0], sizes = [5, 32], strides = [1, 1]} : vector<8x32xbf16> to vector<5x32xbf16>
    %34 = vector.extract_strided_slice %3 {offsets = [2, 0], sizes = [5, 32], strides = [1, 1]} : vector<8x32xbf16> to vector<5x32xbf16>
    %35 = vector.extract_strided_slice %3 {offsets = [3, 0], sizes = [5, 32], strides = [1, 1]} : vector<8x32xbf16> to vector<5x32xbf16>
    %36 = tpu.concatenate %32, %33, %34, %35 in 1 : vector<5x32xbf16>, vector<5x32xbf16>, vector<5x32xbf16>, vector<5x32xbf16> -> vector<5x128xbf16>
    %37 = tpu.concatenate %31, %36 in 0 : vector<5x128xbf16>, vector<5x128xbf16> -> vector<10x128xbf16>
    %c0_11 = arith.constant 0 : index
    %c0_12 = arith.constant 0 : index
    %38 = vector.load %arg3[%c0_11, %c0_12] : memref<128x128xbf16, #tpu.memory_space<vmem>>, vector<128x128xbf16>
    %cst_13 = arith.constant dense<0.000000e+00> : vector<10x128xf32>
    %39 = tpu.matmul %37, %38, %cst_13 {dimension_numbers = #tpu.dot_dimension_numbers<[1], [0], [0], [1], [0, 0, 1, 1], [], []>} : vector<10x128xbf16>, vector<128x128xbf16>, vector<10x128xf32> -> vector<10x128xf32>
    %c0_14 = arith.constant 0 : index
    %c0_15 = arith.constant 0 : index
    %40 = vector.load %arg4[%c0_14, %c0_15] : memref<1x128xf32, #tpu.memory_space<vmem>>, vector<1x128xf32>
    %41 = vector.broadcast %40 : vector<1x128xf32> to vector<10x128xf32>
    %42 = arith.addf %39, %41 : vector<10x128xf32>
    %cst_16 = arith.constant 0.000000e+00 : f32
    %43 = vector.broadcast %cst_16 : f32 to vector<10x128xf32>
    %44 = arith.maximumf %42, %43 : vector<10x128xf32>
    %45 = vector.extract_strided_slice %44 {offsets = [0, 0], sizes = [5, 128], strides = [1, 1]} : vector<10x128xf32> to vector<5x128xf32>
    %cst_17 = arith.constant dense<0xFF800000> : vector<128xf32>
    %46 = vector.multi_reduction <maximumf>, %45, %cst_17 [0] : vector<5x128xf32> to vector<128xf32>
    %47 = vector.shape_cast %46 : vector<128xf32> to vector<1x128xf32>
    %48 = vector.extract_strided_slice %44 {offsets = [5, 0], sizes = [5, 128], strides = [1, 1]} : vector<10x128xf32> to vector<5x128xf32>
    %cst_18 = arith.constant dense<0xFF800000> : vector<128xf32>
    %49 = vector.multi_reduction <maximumf>, %48, %cst_18 [0] : vector<5x128xf32> to vector<128xf32>
    %50 = vector.shape_cast %49 : vector<128xf32> to vector<1x128xf32>
    %51 = tpu.concatenate %47, %50 in 0 : vector<1x128xf32>, vector<1x128xf32> -> vector<2x128xf32>
    %52 = vector.extract_strided_slice %1 {offsets = [0, 0], sizes = [4, 32], strides = [1, 1]} : vector<8x32xbf16> to vector<4x32xbf16>
    %53 = vector.extract_strided_slice %1 {offsets = [1, 0], sizes = [4, 32], strides = [1, 1]} : vector<8x32xbf16> to vector<4x32xbf16>
    %54 = vector.extract_strided_slice %1 {offsets = [2, 0], sizes = [4, 32], strides = [1, 1]} : vector<8x32xbf16> to vector<4x32xbf16>
    %55 = vector.extract_strided_slice %1 {offsets = [3, 0], sizes = [4, 32], strides = [1, 1]} : vector<8x32xbf16> to vector<4x32xbf16>
    %56 = vector.extract_strided_slice %1 {offsets = [4, 0], sizes = [4, 32], strides = [1, 1]} : vector<8x32xbf16> to vector<4x32xbf16>
    %57 = tpu.concatenate %52, %53, %54, %55, %56 in 1 : vector<4x32xbf16>, vector<4x32xbf16>, vector<4x32xbf16>, vector<4x32xbf16>, vector<4x32xbf16> -> vector<4x160xbf16>
    %58 = vector.extract_strided_slice %3 {offsets = [0, 0], sizes = [4, 32], strides = [1, 1]} : vector<8x32xbf16> to vector<4x32xbf16>
    %59 = vector.extract_strided_slice %3 {offsets = [1, 0], sizes = [4, 32], strides = [1, 1]} : vector<8x32xbf16> to vector<4x32xbf16>
    %60 = vector.extract_strided_slice %3 {offsets = [2, 0], sizes = [4, 32], strides = [1, 1]} : vector<8x32xbf16> to vector<4x32xbf16>
    %61 = vector.extract_strided_slice %3 {offsets = [3, 0], sizes = [4, 32], strides = [1, 1]} : vector<8x32xbf16> to vector<4x32xbf16>
    %62 = vector.extract_strided_slice %3 {offsets = [4, 0], sizes = [4, 32], strides = [1, 1]} : vector<8x32xbf16> to vector<4x32xbf16>
    %63 = tpu.concatenate %58, %59, %60, %61, %62 in 1 : vector<4x32xbf16>, vector<4x32xbf16>, vector<4x32xbf16>, vector<4x32xbf16>, vector<4x32xbf16> -> vector<4x160xbf16>
    %64 = tpu.concatenate %57, %63 in 0 : vector<4x160xbf16>, vector<4x160xbf16> -> vector<8x160xbf16>
    %c0_19 = arith.constant 0 : index
    %c0_20 = arith.constant 0 : index
    %65 = vector.load %arg5[%c0_19, %c0_20] : memref<160x128xbf16, #tpu.memory_space<vmem>>, vector<160x128xbf16>
    %cst_21 = arith.constant dense<0.000000e+00> : vector<8x128xf32>
    %66 = tpu.matmul %64, %65, %cst_21 {dimension_numbers = #tpu.dot_dimension_numbers<[1], [0], [0], [1], [0, 0, 1, 1], [], []>} : vector<8x160xbf16>, vector<160x128xbf16>, vector<8x128xf32> -> vector<8x128xf32>
    %c0_22 = arith.constant 0 : index
    %c0_23 = arith.constant 0 : index
    %67 = vector.load %arg6[%c0_22, %c0_23] : memref<1x128xf32, #tpu.memory_space<vmem>>, vector<1x128xf32>
    %68 = vector.broadcast %67 : vector<1x128xf32> to vector<8x128xf32>
    %69 = arith.addf %66, %68 : vector<8x128xf32>
    %cst_24 = arith.constant 0.000000e+00 : f32
    %70 = vector.broadcast %cst_24 : f32 to vector<8x128xf32>
    %71 = arith.maximumf %69, %70 : vector<8x128xf32>
    %72 = vector.extract_strided_slice %71 {offsets = [0, 0], sizes = [4, 128], strides = [1, 1]} : vector<8x128xf32> to vector<4x128xf32>
    %cst_25 = arith.constant dense<0xFF800000> : vector<128xf32>
    %73 = vector.multi_reduction <maximumf>, %72, %cst_25 [0] : vector<4x128xf32> to vector<128xf32>
    %74 = vector.shape_cast %73 : vector<128xf32> to vector<1x128xf32>
    %75 = vector.extract_strided_slice %71 {offsets = [4, 0], sizes = [4, 128], strides = [1, 1]} : vector<8x128xf32> to vector<4x128xf32>
    %cst_26 = arith.constant dense<0xFF800000> : vector<128xf32>
    %76 = vector.multi_reduction <maximumf>, %75, %cst_26 [0] : vector<4x128xf32> to vector<128xf32>
    %77 = vector.shape_cast %76 : vector<128xf32> to vector<1x128xf32>
    %78 = tpu.concatenate %74, %77 in 0 : vector<1x128xf32>, vector<1x128xf32> -> vector<2x128xf32>
    %79 = tpu.concatenate %26, %51, %78 in 1 : vector<2x128xf32>, vector<2x128xf32>, vector<2x128xf32> -> vector<2x384xf32>
    %80 = arith.truncf %79 : vector<2x384xf32> to vector<2x384xbf16>
    %c0_27 = arith.constant 0 : index
    %c0_28 = arith.constant 0 : index
    %81 = vector.load %arg7[%c0_27, %c0_28] : memref<384x128xbf16, #tpu.memory_space<vmem>>, vector<384x128xbf16>
    %cst_29 = arith.constant dense<0.000000e+00> : vector<2x128xf32>
    %82 = tpu.matmul %80, %81, %cst_29 {dimension_numbers = #tpu.dot_dimension_numbers<[1], [0], [0], [1], [0, 0, 1, 1], [], []>} : vector<2x384xbf16>, vector<384x128xbf16>, vector<2x128xf32> -> vector<2x128xf32>
    %c0_30 = arith.constant 0 : index
    %c0_31 = arith.constant 0 : index
    %83 = vector.load %arg8[%c0_30, %c0_31] : memref<1x128xf32, #tpu.memory_space<vmem>>, vector<1x128xf32>
    %84 = vector.broadcast %83 : vector<1x128xf32> to vector<2x128xf32>
    %85 = arith.addf %82, %84 : vector<2x128xf32>
    %c0_32 = arith.constant 0 : index
    %c0_33 = arith.constant 0 : index
    %86 = vector.load %arg9[%c0_32, %c0_33] : memref<2x128xf32, #tpu.memory_space<vmem>>, vector<2x128xf32>
    tpu.vector_store %arg9[%c0_32, %c0_33], %85 {strides = array<i32>} : memref<2x128xf32, #tpu.memory_space<vmem>>, vector<2x128xf32>,
    return
  }
}

</mosaic_0001>

<bundles_post_ra>
// kernel: tpu_custom_call.1
= control target key start
LH: loop header
LB: loop body
LE: loop exit
PB: predicated region body
PF: predicated region fallthrough
CT: control target
= control target key end

     0   :  { %14 = vsyncpa [#allocation3], 0  ;;  %s1492_s0 = inlined_call_operand.hbm [shape: bf16[2,8,32], index: 0, kind: input, shape index: {}]   ;;  %s1493_s1 = inlined_call_operand.hbm [shape: bf16[96,128], index: 1, kind: input, shape index: {}]   ;;  %s1494_s2 = inlined_call_operand.vmem [shape: f32[1,128], index: 2, kind: input, shape index: {}]   ;;  %s1495_s3 = inlined_call_operand.hbm [shape: bf16[128,128], index: 3, kind: input, shape index: {}]   ;;  %s1496_s4 = inlined_call_operand.vmem [shape: f32[1,128], index: 4, kind: input, shape index: {}]   ;;  %s1497_s5 = inlined_call_operand.hbm [shape: bf16[160,128], index: 5, kind: input, shape index: {}]   ;;  %s1498_s6 = inlined_call_operand.vmem [shape: f32[1,128], index: 6, kind: input, shape index: {}]   ;;  %s1499_s7 = inlined_call_operand.hbm [shape: bf16[384,128], index: 7, kind: input, shape index: {}]   ;;  %s1500_s8 = inlined_call_operand.vmem [shape: f32[1,128], index: 8, kind: input, shape index: {}]   ;;  %s1501_s9 = inlined_call_operand.hbm [shape: f32[2,128], index: 9, kind: output, shape index: {}]  }
   0x1   :  { %15 = vsyncpa [#allocation6], 0 }
   0x2   :  { %16 = vsyncpa [#allocation9], 0 }
   0x3   :  { %17 = vsyncpa [#allocation4], 0  ;;  %s1255_s30 = smov [#allocation5]   ;;  %s1256_s11 = smov [#allocation8]  }
   0x4   :  { %s35_s10 = sshll.u32 %s1255_s30, 4  ;;  %s63_s12 = sshll.u32 %s1256_s11, 4  ;;  %s36_s10 = int_to_ptr.vmem [resolvable:$true] %s35_s10  ;;  %s1318_s12 = int_to_ptr.vmem [resolvable:$true] %s63_s12 }
   0x5   :  { %s1115_s15 = scalar_lea.hbm %s1493_s1, 768 }
   0x6   :  { %p1116_p0 = scmp.ne.s32.totalorder %s1493_s1, %s1115_s15  ;;  %p1119_p1 = scmp.lt.u32.totalorder %s1115_s15, %s1493_s1 }
   0x8   :  { %p1121_p2 = pnand %p1119_p1, %p1116_p0 }
   0xa   :  { %1124 = shalt.err (!%p1121_p2)
}
   0xb   :  { %s1125_s20 = scalar_lea.vmem %s36_s10, 768  ;;  %p1130_p4 = scmp.lt.s32.totalorder %s36_s10, %s36_s10 }
   0xc   :  { %p1126_p3 = scmp.ne.s32.totalorder %s36_s10, %s1125_s20  ;;  %p1131_p5 = scmp.lt.s32.totalorder %s1125_s20, %s1125_s20 }
   0xe   :  { %p1132_p6 = por %p1131_p5, %p1130_p4 }
  0x10   :  { %p1133_p7 = pnand %p1132_p6, %p1126_p3 }
  0x12   :  { %1136 = shalt.err (!%p1133_p7)
}
  0x13   :  { %s1257_s21 = smov 64   ;;  %s1258_s22 = smov 4  }
  0x14   :  { %41 = dma.hbm_to_vmem [thread:$0]  %s1493_s1, 768, %s36_s10, [#allocation6], %s1257_s21, %s1257_s21, %s1258_s22  }
  0x15   :  { %s1137_s27 = scalar_lea.hbm %s1497_s5, 1280 }
  0x16   :  { %p1138_p8 = scmp.ne.s32.totalorder %s1497_s5, %s1137_s27  ;;  %p1141_p9 = scmp.lt.u32.totalorder %s1137_s27, %s1497_s5 }
  0x18   :  { %p1143_p10 = pnand %p1141_p9, %p1138_p8 }
  0x1a   :  { %1146 = shalt.err (!%p1143_p10)
}
  0x1b   :  { %s1147_s13 = scalar_lea.vmem %s1318_s12, 1280  ;;  %p1152_p12 = scmp.lt.s32.totalorder %s1318_s12, %s1318_s12 }
  0x1c   :  { %p1148_p11 = scmp.ne.s32.totalorder %s1318_s12, %s1147_s13  ;;  %p1153_p13 = scmp.lt.s32.totalorder %s1147_s13, %s1147_s13 }
  0x1e   :  { %p1154_p0 = por %p1153_p13, %p1152_p12 }
  0x20   :  { %p1155_p1 = pnand %p1154_p0, %p1148_p11 }
  0x22   :  { %1158 = shalt.err (!%p1155_p1)
}
  0x23   :  { %69 = dma.hbm_to_vmem [thread:$0]  %s1497_s5, 1280, %s1318_s12, [#allocation9], %s1257_s21, %s1257_s21, %s1258_s22  }
  0x24   :  { %s1259_s14 = smov [#allocation2]   ;;  %s1260_s16 = smov [#allocation7]  }
  0x25   :  { %s23_s15 = sshll.u32 %s1259_s14, 4  ;;  %s49_s17 = sshll.u32 %s1260_s16, 4  ;;  %s24_s15 = int_to_ptr.vmem [resolvable:$true] %s23_s15  ;;  %s1355_s17 = int_to_ptr.vmem [resolvable:$true] %s49_s17 }
  0x26   :  { %s1159_s20 = scalar_lea.hbm %s1492_s0, 128 }
  0x27   :  { %p1160_p2 = scmp.ne.s32.totalorder %s1492_s0, %s1159_s20  ;;  %p1163_p3 = scmp.lt.u32.totalorder %s1159_s20, %s1492_s0 }
  0x29   :  { %p1165_p4 = pnand %p1163_p3, %p1160_p2 }
  0x2b   :  { %1168 = shalt.err (!%p1165_p4)
}
  0x2c   :  { %s1169_s5 = scalar_lea.vmem %s24_s15, 128  ;;  %p1174_p6 = scmp.lt.s32.totalorder %s24_s15, %s24_s15 }
  0x2d   :  { %p1170_p5 = scmp.ne.s32.totalorder %s24_s15, %s1169_s5  ;;  %p1175_p7 = scmp.lt.s32.totalorder %s1169_s5, %s1169_s5 }
  0x2f   :  { %p1176_p8 = por %p1175_p7, %p1174_p6 }
  0x31   :  { %p1177_p9 = pnand %p1176_p8, %p1170_p5 }
  0x33   :  { %1180 = shalt.err (!%p1177_p9)
}
  0x34   :  { %29 = dma.hbm_to_vmem [thread:$0]  %s1492_s0, 128, %s24_s15, [#allocation3], %s1257_s21, %s1257_s21, %s1258_s22  }
  0x35   :  { %s1181_s30 = scalar_lea.hbm %s1495_s3, 1024 }
  0x36   :  { %p1182_p10 = scmp.ne.s32.totalorder %s1495_s3, %s1181_s30  ;;  %p1185_p11 = scmp.lt.u32.totalorder %s1181_s30, %s1495_s3 }
  0x38   :  { %p1187_p12 = pnand %p1185_p11, %p1182_p10 }
  0x3a   :  { %1190 = shalt.err (!%p1187_p12)
}
  0x3b   :  { %s1191_s14 = scalar_lea.vmem %s1355_s17, 1024  ;;  %p1196_p0 = scmp.lt.s32.totalorder %s1355_s17, %s1355_s17 }
  0x3c   :  { %p1192_p13 = scmp.ne.s32.totalorder %s1355_s17, %s1191_s14  ;;  %p1197_p1 = scmp.lt.s32.totalorder %s1191_s14, %s1191_s14 }
  0x3e   :  { %p1198_p2 = por %p1197_p1, %p1196_p0 }
  0x40   :  { %p1199_p3 = pnand %p1198_p2, %p1192_p13 }
  0x42   :  { %1202 = shalt.err (!%p1199_p3)
}
  0x43   :  { %55 = dma.hbm_to_vmem [thread:$0]  %s1495_s3, 1024, %s1355_s17, [#allocation6], %s1257_s21, %s1257_s21, %s1258_s22  }
  0x44   :  { %s1261_s16 = smov [#allocation10]   ;;  %s1203_s23 = scalar_lea.hbm %s1499_s7, 3072 }
  0x45   :  { %s77_s18 = sshll.u32 %s1261_s16, 4  ;;  %p1204_p4 = scmp.ne.s32.totalorder %s1499_s7, %s1203_s23  ;;  %s78_s18 = int_to_ptr.vmem [resolvable:$true] %s77_s18 }
  0x46   :  { %p1207_p5 = scmp.lt.u32.totalorder %s1203_s23, %s1499_s7 }
  0x48   :  { %p1209_p6 = pnand %p1207_p5, %p1204_p4 }
  0x4a   :  { %1212 = shalt.err (!%p1209_p6)
}
  0x4b   :  { %s1213_s12 = scalar_lea.vmem %s78_s18, 3072  ;;  %p1218_p8 = scmp.lt.s32.totalorder %s78_s18, %s78_s18 }
  0x4c   :  { %p1214_p7 = scmp.ne.s32.totalorder %s78_s18, %s1213_s12  ;;  %p1219_p9 = scmp.lt.s32.totalorder %s1213_s12, %s1213_s12 }
  0x4e   :  { %p1220_p10 = por %p1219_p9, %p1218_p8 }
  0x50   :  { %p1221_p11 = pnand %p1220_p10, %p1214_p7 }
  0x52   :  { %1224 = shalt.err (!%p1221_p11)
}
  0x53   :  { %83 = dma.hbm_to_vmem [thread:$0]  %s1499_s7, 3072, %s78_s18, [#allocation9], %s1257_s21, %s1257_s21, %s1258_s22  }
  0x54   :  { %1247 = dma.done.wait [#allocation3], 128  }
  0x55   :  { %1248 = vsyncadd [#allocation3], 4294967168 }
  0x56   :  { %1249 = dma.done.wait [#allocation6], 1792  }
  0x57   :  { %1250 = vsyncadd [#allocation6], 4294965504 }
  0x58   :  { %1251 = dma.done.wait [#allocation9], 4352  }
  0x59   :  { %1252 = vsyncadd [#allocation9], 4294962944  ;;  %v1262_v0 = vmov 0   ;;  %v1263_v1 = vmov 0.0   ;;  %v1409_v2 = vld [vmem:[#allocation2 + $0x4] sm:$0xf] }
  0x5a   :  { %535 = vmatprep.subr.bf16.mxu0 %v1262_v0  ;;  %996 = vmatprep.subr.bf16.mxu1 %v1263_v1  ;;  %v1411_v3 = vld [vmem:[#allocation2] sm:$0xf]  ;;  %v893_v4 = vcombine.low %v1409_v2, %v1409_v2  ;;  %v1067_v6 = vld [vmem:[#allocation8] sm:$0xff]   ;;  %vm1264_vm0 = vmmov 0   ;;  %v1070_v12 = vld [vmem:[#allocation5] sm:$0xff]   ;;  %vm425_vm1 = vcmask 1041408  }
  0x5b   :  { %v892_v5 = vcombine.low %v1411_v3, %v1411_v3  ;;  %v1068_v7 = vld [vmem:[#allocation8 + $0x8] sm:$0xff]   ;;  %1008 = vmatprep.mubr.msk.bf16.mxu1 %vm1264_vm0, %v1263_v1  ;;  %536 = vmatpush1.bf16.msra.mxu0 %v1067_v6  ;;  %v1069_v18 = vld [vmem:[#allocation8 + $0x10] sm:$0xff]   ;;  %v1072_v23 = vld [vmem:[#allocation5 + $0x8] sm:$0xff]   ;;  %s1265_s7 = smov 32   ;;  %vm120_vm2 = vcmask 261120   ;;  %s1266_s22 = smov 96  }
  0x5c   :  { %v131_v8 = vshrl.u32 %v893_v4, 16  ;;  %v133_v9 = vshll.u32 %v893_v4, 16  ;;  %537 = vmatprep.subr.bf16.mxu0 %v1262_v0  ;;  %v139_v15 = vrot.slane %v893_v4, 1  ;;  %997 = vmatpush3.bf16.msra.mxu1 %v1070_v12  ;;  %v1074_v26 = vld [vmem:[#allocation5 + $0x10] sm:$0xff]   ;;  %v1071_v27 = vld [vmem:[#allocation8 + $0x18] sm:$0xff]   ;;  %v1076_v31 = vld [vmem:[#allocation5 + $0x18] sm:$0xff]  }
  0x5d   :  { %v109_v10 = vshrl.u32 %v892_v5, 16  ;;  %v111_v11 = vshll.u32 %v892_v5, 16  ;;  %v117_v16 = vrot.slane %v892_v5, 1  ;;  %998 = vmatprep.subr.bf16.mxu1 %v1263_v1  ;;  %v435_v25 = vrot.slane %v892_v5, 2  ;;  %v1073_v32 = vld [vmem:[#allocation8 + $0x20] sm:$0xff]   ;;  %v1078_v33 = vld [vmem:[#allocation5 + $0x20] sm:$0xff]  }
  0x5e   :  { %v135_v13 = vrot.slane %v133_v9, 1  ;;  %v282_v17 = vrot.slane %v131_v8, 1  ;;  %v283_v22 = vrot.slane %v133_v9, 2  ;;  %v1075_v34 = vld [vmem:[#allocation8 + $0x28] sm:$0xff]   ;;  %v1080_v35 = vld [vmem:[#allocation5 + $0x28] sm:$0xff]   ;;  %v1077_v36 = vld [vmem:[#allocation8 + $0x30] sm:$0xff]  }
  0x5f   :  { %v113_v14 = vrot.slane %v111_v11, 1  ;;  %v274_v21 = vrot.slane %v109_v10, 1  ;;  %538 = vmatpush1.bf16.msra.mxu0 %v1068_v7  ;;  %v275_v24 = vrot.slane %v111_v11, 2  ;;  %v445_v28 = vsel %vm425_vm1, %v435_v25, %v893_v4  ;;  %v1079_v37 = vld [vmem:[#allocation8 + $0x38] sm:$0xff]   ;;  %v1081_v38 = vld [vmem:[#allocation8 + $0x40] sm:$0xff]   ;;  %v1083_v39 = vld [vmem:[#allocation8 + $0x48] sm:$0xff]  }
  0x60   :  { %v136_v19 = vor.u32 %v135_v13, %v131_v8  ;;  %539 = vmatprep.subr.bf16.mxu0 %v1262_v0  ;;  %999 = vmatpush3.bf16.msra.mxu1 %v1072_v23  ;;  %v284_v29 = vor.u32 %v283_v22, %v282_v17  ;;  %vm124_vm3 = vcmask 523264   ;;  %vm149_vm4 = vcmask 1042432   ;;  %v1082_v48 = vld [vmem:[#allocation7] sm:$0xff]   ;;  %v1084_v55 = vld [vmem:[#allocation7 + $0x8] sm:$0xff]   ;;  %v1091_v56 = vld [vmem:[#allocation10 + $0x80] sm:$0xff]   ;;  %s1267_s11 = smov [#allocation11]  }
  0x61   :  { %v114_v20 = vor.u32 %v113_v14, %v109_v10  ;;  %1000 = vmatprep.subr.bf16.mxu1 %v1263_v1  ;;  %923 = vmatprep.mubr.msk.bf16.mxu0 %vm120_vm2, %v445_v28  ;;  %v276_v30 = vor.u32 %v275_v24, %v274_v21  ;;  %vm207_vm5 = vcmask 785408   ;;  %v1085_v59 = vld [vmem:[#allocation7 + $0x10] sm:$0xff]   ;;  %v1092_v60 = vld [vmem:[#allocation10 + $0x88] sm:$0xff]   ;;  %v1087_v62 = vld [vmem:[#allocation7 + $0x20] sm:$0xff]   ;;  %vm298_vm6 = vsmask.f32 2304 }
  0x62   :  { %137 = vrot.lane.b32.xlu0 %v136_v19, %s1265_s7  ;;  %v1086_v61 = vld [vmem:[#allocation7 + $0x18] sm:$0xff]   ;;  %v1088_v63 = vld [vmem:[#allocation7 + $0x28] sm:$0xff]   ;;  %vm299_vm7 = vmand %vm149_vm4, %vm298_vm6  ;;  %vm253_vm8 = vcmask 1045504   ;;  %vm261_vm9 = vcmask 1047558   ;;  %vm263_vm10 = vcmask 1043456   ;;  %vm583_vm11 = vcmask 1047556  }
  0x63   :  { %115 = vrot.lane.b32.xlu1 %v114_v20, %s1265_s7  ;;  %540 = vmatpush1.bf16.msra.mxu0 %v1069_v18  ;;  %v1090_v6 = vld [vmem:[#allocation7 + $0x38] sm:$0xff]   ;;  %v1093_v9 = vld [vmem:[#allocation10 + $0x90] sm:$0xff]   ;;  %v1094_v10 = vld [vmem:[#allocation10 + $0x98] sm:$0xff]   ;;  %vm272_vm12 = vcmask 1040384   ;;  %vm415_vm13 = vcmask 1044480   ;;  %vm423_vm14 = vcmask 1047557  }
  0x64   :  { %541 = vmatprep.subr.bf16.mxu0 %v1262_v0  ;;  %1001 = vmatpush3.bf16.msra.mxu1 %v1074_v26  ;;  %v1095_v11 = vld [vmem:[#allocation10 + $0xa0] sm:$0xff]   ;;  %v1096_v12 = vld [vmem:[#allocation10 + $0xa8] sm:$0xff]   ;;  %v1097_v13 = vld [vmem:[#allocation10 + $0xb0] sm:$0xff]   ;;  %s881_s13 = sshll.u32 %s1267_s11, 4  ;;  %s882_s13 = int_to_ptr.vmem [resolvable:$true] %s881_s13 }
  0x65   :  { %1002 = vmatprep.subr.bf16.mxu1 %v1263_v1  ;;  %v1098_v14 = vld [vmem:[#allocation10 + $0xb8] sm:$0xff]   ;;  %v1101_v17 = vld [vmem:[#allocation10 + $0x48] sm:$0xff]   ;;  %v1103_v19 = vld [vmem:[#allocation10 + $0x50] sm:$0xff]   ;;  %s1225_s1 = scalar_lea.vmem %s882_s13, 32  ;;  %p1230_p13 = scmp.lt.s32.totalorder %s882_s13, %s882_s13 }
  0x66   :  { %140 = vrot.lane.b32.xlu0 %v139_v15, %s1257_s21  ;;  %v1099_v15 = vld [vmem:[#allocation10 + $0x40] sm:$0xff]   ;;  %v1102_v18 = vld [vmem:[#allocation10 + $0x8] sm:$0xff]   ;;  %v1104_v20 = vld [vmem:[#allocation10 + $0x10] sm:$0xff]   ;;  %p1226_p12 = scmp.ne.s32.totalorder %s882_s13, %s1225_s1  ;;  %p1231_p0 = scmp.lt.s32.totalorder %s1225_s1, %s1225_s1 }
  0x67   :  { %118 = vrot.lane.b32.xlu1 %v117_v16, %s1257_s21  ;;  %542 = vmatpush1.bf16.msra.mxu0 %v1071_v27  ;;  %v1100_v16 = vld [vmem:[#allocation10] sm:$0xff]   ;;  %v1105_v21 = vld [vmem:[#allocation10 + $0x58] sm:$0xff]   ;;  %v1109_v24 = vld [vmem:[#allocation10 + $0x68] sm:$0xff]  }
  0x68   :  { %543 = vmatprep.subr.bf16.mxu0 %v1262_v0  ;;  %1003 = vmatpush3.bf16.msra.mxu1 %v1076_v31  ;;  %v1106_v22 = vld [vmem:[#allocation10 + $0x18] sm:$0xff]   ;;  %v1107_v23 = vld [vmem:[#allocation10 + $0x60] sm:$0xff]   ;;  %v1110_v25 = vld [vmem:[#allocation10 + $0x28] sm:$0xff]   ;;  %p1232_p1 = por %p1231_p0, %p1230_p13 }
  0x69   :  { %1004 = vmatprep.subr.bf16.mxu1 %v1263_v1  ;;  %v1111_v26 = vld [vmem:[#allocation10 + $0x70] sm:$0xff]   ;;  %v1113_v28 = vld [vmem:[#allocation10 + $0x78] sm:$0xff]  }
  0x6a   :  { %285 = vrot.lane.b32.xlu0 %v284_v29, %s1266_s22  ;;  %v1112_v27 = vld [vmem:[#allocation10 + $0x30] sm:$0xff]   ;;  %v1114_v29 = vld [vmem:[#allocation10 + $0x38] sm:$0xff]   ;;  %p1233_p2 = pnand %p1232_p1, %p1226_p12 }
  0x6b   :  { %277 = vrot.lane.b32.xlu1 %v276_v30, %s1266_s22  ;;  %544 = vmatpush1.bf16.msra.mxu0 %v1073_v32  ;;  %v894_v30 = vld [vmem:[%s1494_s2] ss:$0 sm:$0xff] }
  0x6c   :  { %545 = vmatprep.subr.bf16.mxu0 %v1262_v0  ;;  %1005 = vmatpush3.bf16.msra.mxu1 %v1078_v33 }
  0x6d   :  { %1006 = vmatprep.subr.bf16.mxu1 %v1263_v1 }
  0x6f   :  { %546 = vmatpush1.bf16.msra.mxu0 %v1075_v34 }
  0x70   :  { %547 = vmatprep.subr.bf16.mxu0 %v1262_v0  ;;  %1007 = vmatpush3.bf16.msra.mxu1 %v1080_v35  ;;  %v912_v35 = vld [vmem:[%s1498_s6] ss:$0 sm:$0xff] }
  0x71   :  { %1012 = vmatprep.subr.bf16.mxu1 %v1263_v1 }
  0x73   :  { %548 = vmatpush1.bf16.msra.mxu0 %v1077_v36 }
  0x74   :  { %549 = vmatprep.subr.bf16.mxu0 %v1262_v0 }
  0x77   :  { %550 = vmatpush1.bf16.msra.mxu0 %v1079_v37 }
  0x78   :  { %551 = vmatprep.subr.bf16.mxu0 %v1262_v0 }
  0x7b   :  { %552 = vmatpush1.bf16.msra.mxu0 %v1081_v38 }
  0x7c   :  { %553 = vmatprep.subr.bf16.mxu0 %v1262_v0 }
  0x7f   :  { %554 = vmatpush1.bf16.msra.mxu0 %v1083_v39 }
  0x80   :  { %1032 = vmatprep.subr.bf16.mxu0 %v1263_v1 }
  0xd4   :  { %v138_v40 = vpop.permute.xlu0 %137 }
  0xd5   :  { %v116_v41 = vpop.permute.xlu1 %115  ;;  %v144_v42 = vsel %vm120_vm2, %v1409_v2, %v138_v40 }
  0xd6   :  { %v123_v43 = vsel %vm120_vm2, %v1411_v3, %v116_v41  ;;  %v1089_v3 = vld [vmem:[#allocation7 + $0x30] sm:$0xff]  }
  0xd8   :  { %v141_v44 = vpop.permute.xlu0 %140 }
  0xd9   :  { %v119_v45 = vpop.permute.xlu1 %118  ;;  %v146_v46 = vsel %vm124_vm3, %v144_v42, %v141_v44 }
  0xda   :  { %v148_v47 = vrot.slane %v146_v46, 5  ;;  %v126_v49 = vsel %vm124_vm3, %v123_v43, %v119_v45 }
  0xdc   :  { %v286_v50 = vpop.permute.xlu0 %285  ;;  %v151_v52 = vsel %vm149_vm4, %v126_v49, %v148_v47 }
  0xdd   :  { %v278_v51 = vpop.permute.xlu1 %277  ;;  %v288_v53 = vsel %vm207_vm5, %v146_v46, %v286_v50  ;;  %1009 = vmatmul.mubr.msk.bf16.vlgmr.msra.gmra.mrb[0].mxu1 %vm207_vm5, %v151_v52 }
  0xde   :  { %v438_v54 = vrot.slane %v288_v53, 6  ;;  %1013 = vmatpush3.bf16.msra.mxu1 %v1082_v48  ;;  %1028 = vmatprep.mubr.msk.bf16.mxu1 %vm1264_vm0, %v1263_v1  ;;  %v280_v57 = vsel %vm207_vm5, %v126_v49, %v278_v51  ;;  %v289_v0 = vshrl.u32 %v288_v53, 16  ;;  %v292_v2 = vshll.u32 %v288_v53, 16 }
  0xdf   :  { %1014 = vmatprep.subr.bf16.mxu1 %v1263_v1 }
  0xe0   :  { %v441_v58 = vsel %vm425_vm1, %v280_v57, %v438_v54  ;;  %v291_v4 = vrot.slane %v289_v0, 5  ;;  %v294_v5 = vrot.slane %v292_v2, 6 }
  0xe1   :  { %568 = vmatmul.mubr.bf16.vlgmr.msra.gmra.mrb[0].mxu0 %v441_v58 }
  0xe2   :  { %1015 = vmatpush3.bf16.msra.mxu1 %v1084_v55  ;;  %1033 = vmatpush3.bf16.msra.mxu0 %v1091_v56  ;;  %v295_v7 = vor.u32 %v294_v5, %v291_v4 }
  0xe3   :  { %1016 = vmatprep.subr.bf16.mxu1 %v1263_v1  ;;  %1034 = vmatprep.subr.bf16.mxu0 %v1263_v1 }
  0xe4   :  { %1048 = vmatprep.mubr.msk.bf16.mxu0 %vm1264_vm0, %v1263_v1  ;;  %v300_v8 = vsel %vm299_vm7, %v280_v57, %v295_v7 }
  0xe6   :  { %1017 = vmatpush3.bf16.msra.mxu1 %v1085_v59  ;;  %1035 = vmatpush3.bf16.msra.mxu0 %v1092_v60 }
  0xe7   :  { %1018 = vmatprep.subr.bf16.mxu1 %v1263_v1  ;;  %1036 = vmatprep.subr.bf16.mxu0 %v1263_v1 }
  0xea   :  { %1019 = vmatpush3.bf16.msra.mxu1 %v1086_v61  ;;  %1037 = vmatpush3.bf16.msra.mxu0 %v1093_v9 }
  0xeb   :  { %1020 = vmatprep.subr.bf16.mxu1 %v1263_v1  ;;  %1038 = vmatprep.subr.bf16.mxu0 %v1263_v1 }
  0xee   :  { %1021 = vmatpush3.bf16.msra.mxu1 %v1087_v62  ;;  %1039 = vmatpush3.bf16.msra.mxu0 %v1094_v10 }
  0xef   :  { %1022 = vmatprep.subr.bf16.mxu1 %v1263_v1  ;;  %1040 = vmatprep.subr.bf16.mxu0 %v1263_v1 }
  0xf2   :  { %1023 = vmatpush3.bf16.msra.mxu1 %v1088_v63  ;;  %1041 = vmatpush3.bf16.msra.mxu0 %v1095_v11 }
  0xf3   :  { %1024 = vmatprep.subr.bf16.mxu1 %v1263_v1  ;;  %1042 = vmatprep.subr.bf16.mxu0 %v1263_v1 }
  0xf6   :  { %1025 = vmatpush3.bf16.msra.mxu1 %v1089_v3  ;;  %1043 = vmatpush3.bf16.msra.mxu0 %v1096_v12 }
  0xf7   :  { %1026 = vmatprep.subr.bf16.mxu1 %v1263_v1  ;;  %1044 = vmatprep.subr.bf16.mxu0 %v1263_v1 }
  0xfa   :  { %1027 = vmatpush3.bf16.msra.mxu1 %v1090_v6  ;;  %1045 = vmatpush3.bf16.msra.mxu0 %v1097_v13 }
  0xfb   :  { %1046 = vmatprep.subr.bf16.mxu0 %v1263_v1  ;;  %965 = vmatprep.subr.bf16.mxu1 %v1099_v15  ;;  %v1108_v1 = vld [vmem:[#allocation10 + $0x20] sm:$0xff]  }
  0xfd   :  { %1029 = vmatmul.mubr.bf16.vlgmr.msra.gmra.mrb[4].mxu1 %v300_v8 }
  0xfe   :  { %1047 = vmatpush3.bf16.msra.mxu0 %v1098_v14  ;;  %966 = vmatpush3.bf16.msra.mxu1 %v1100_v16  ;;  %v902_v16 = vld [vmem:[%s1496_s4] ss:$0 sm:$0xff] }
  0xff   :  { %967 = vmatprep.subr.bf16.mxu1 %v1101_v17 }
 0x102   :  { %968 = vmatpush3.bf16.msra.mxu1 %v1102_v18 }
 0x103   :  { %969 = vmatprep.subr.bf16.mxu1 %v1103_v19 }
 0x106   :  { %970 = vmatpush3.bf16.msra.mxu1 %v1104_v20 }
 0x107   :  { %971 = vmatprep.subr.bf16.mxu1 %v1105_v21 }
 0x10a   :  { %972 = vmatpush3.bf16.msra.mxu1 %v1106_v22 }
 0x10b   :  { %973 = vmatprep.subr.bf16.mxu1 %v1107_v23 }
 0x10e   :  { %974 = vmatpush3.bf16.msra.mxu1 %v1108_v1 }
 0x10f   :  { %975 = vmatprep.subr.bf16.mxu1 %v1109_v24 }
 0x112   :  { %976 = vmatpush3.bf16.msra.mxu1 %v1110_v25 }
 0x113   :  { %977 = vmatprep.subr.bf16.mxu1 %v1111_v26 }
 0x116   :  { %978 = vmatpush3.bf16.msra.mxu1 %v1112_v27 }
 0x117   :  { %979 = vmatprep.subr.bf16.mxu1 %v1113_v28 }
 0x11a   :  { %980 = vmatpush3.bf16.msra.mxu1 %v1114_v29 }
 0x1b0   :  { %v244_v31 = vpop.f32.mrb[0].mxu1 }
 0x1b1   :  { %v245_v32 = vadd.f32 %v894_v30, %v244_v31  ;;  %v1010_v33 = vpop.f32.mrb[1].mxu1 }
 0x1b2   :  { %v247_v34 = vpop.f32.mrb[2].mxu1 }
 0x1b3   :  { %v251_v36 = vmax.f32 %v245_v32, 0.0  ;;  %v248_v37 = vadd.f32 %v894_v30, %v247_v34  ;;  %v1011_v38 = vpop.f32.mrb[3].mxu1 }
 0x1b4   :  { %v569_v39 = vpop.f32.mrb[0].mxu0 }
 0x1b5   :  { %v254_v40 = vsel %vm253_vm8, %v251_v36, -inf  ;;  %v252_v41 = vmax.f32 %v248_v37, 0.0  ;;  %v570_v42 = vadd.f32 %v912_v35, %v569_v39  ;;  %v571_v43 = vpop.f32.mrb[1].mxu0  ;;  %v262_v46 = vsel %vm261_vm9, %v251_v36, -inf }
 0x1b6   :  { %v255_v44 = vrot.slane %v254_v40, 4  ;;  %v572_v45 = vpop.f32.mrb[2].mxu0 }
 0x1b7   :  { %v264_v47 = vsel %vm263_vm10, %v252_v41, -inf  ;;  %v575_v48 = vmax.f32 %v570_v42, 0.0  ;;  %v573_v49 = vpop.f32.mrb[3].mxu0 }
 0x1b8   :  { %v256_v50 = vmax.f32 %v254_v40, %v255_v44  ;;  %v265_v51 = vmax.f32 %v262_v46, %v264_v47 }
 0x1b9   :  { %v576_v52 = vsel %vm263_vm10, %v575_v48, -inf  ;;  %v584_v53 = vsel %vm583_vm11, %v575_v48, -inf  ;;  %v924_v48 = vld [vmem:[%s1500_s8] ss:$0 sm:$0xff] }
 0x1ba   :  { %v257_v54 = vrot.slane %v256_v50, 2  ;;  %v266_v55 = vrot.slane %v265_v51, 4  ;;  %v577_v56 = vrot.slane %v576_v52, 4  ;;  %v585_v57 = vrot.slane %v584_v53, 4 }
 0x1bc   :  { %v258_v58 = vmax.f32 %v256_v50, %v257_v54  ;;  %v267_v59 = vmax.f32 %v265_v51, %v266_v55  ;;  %v578_v60 = vmax.f32 %v576_v52, %v577_v56  ;;  %v586_v61 = vmax.f32 %v584_v53, %v585_v57 }
 0x1be   :  { %v268_v62 = vrot.slane %v267_v59, 2  ;;  %v579_v63 = vrot.slane %v578_v60, 2  ;;  %v587_v0 = vrot.slane %v586_v61, 2  ;;  %v259_v2 = vrot.slane %v258_v58, 1 }
 0x1c0   :  { %v269_v3 = vmax.f32 %v267_v59, %v268_v62  ;;  %v580_v4 = vmax.f32 %v578_v60, %v579_v63  ;;  %v588_v5 = vmax.f32 %v586_v61, %v587_v0  ;;  %v260_v9 = vmax.f32 %v258_v58, %v259_v2 }
 0x1c2   :  { %v270_v6 = vrot.slane %v269_v3, 1  ;;  %v581_v7 = vrot.slane %v580_v4, 1  ;;  %v589_v8 = vrot.slane %v588_v5, 1 }
 0x1c4   :  { %v271_v10 = vmax.f32 %v269_v3, %v270_v6  ;;  %v582_v11 = vmax.f32 %v580_v4, %v581_v7  ;;  %v590_v12 = vmax.f32 %v588_v5, %v589_v8 }
 0x1c6   :  { %v591_v13 = vsel %vm272_vm12, %v582_v11, %v590_v12  ;;  %v273_v14 = vsel %vm272_vm12, %v260_v9, %v271_v10 }
 0x1c7   :  { %v594_v15 = vpack.c.bf16 %v591_v13, %v591_v13  ;;  %v592_v42 = vpack.c.bf16 %v273_v14, %v273_v14 }
 0x1c9   :  { %1049 = vmatmul.mubr.bf16.vlgmr.msra.gmra.mrb[4].mxu0 %v594_v15 }
 0x1d0   :  { %v406_v17 = vpop.f32.mrb[4].mxu1 }
 0x1d1   :  { %v407_v18 = vadd.f32 %v902_v16, %v406_v17  ;;  %v1030_v19 = vpop.f32.mrb[5].mxu1 }
 0x1d2   :  { %v409_v20 = vpop.f32.mrb[6].mxu1 }
 0x1d3   :  { %v413_v21 = vmax.f32 %v407_v18, 0.0  ;;  %v410_v22 = vadd.f32 %v902_v16, %v409_v20  ;;  %v1031_v23 = vpop.f32.mrb[7].mxu1 }
 0x1d5   :  { %v416_v1 = vsel %vm415_vm13, %v413_v21, -inf  ;;  %v414_v24 = vmax.f32 %v410_v22, 0.0  ;;  %v424_v26 = vsel %vm423_vm14, %v413_v21, -inf }
 0x1d6   :  { %v417_v25 = vrot.slane %v416_v1, 4 }
 0x1d7   :  { %v426_v27 = vsel %vm425_vm1, %v414_v24, -inf }
 0x1d8   :  { %v418_v28 = vmax.f32 %v416_v1, %v417_v25  ;;  %v427_v29 = vmax.f32 %v424_v26, %v426_v27 }
 0x1da   :  { %v419_v30 = vrot.slane %v418_v28, 2  ;;  %v428_v31 = vrot.slane %v427_v29, 4 }
 0x1dc   :  { %v420_v32 = vmax.f32 %v418_v28, %v419_v30  ;;  %v429_v33 = vmax.f32 %v427_v29, %v428_v31 }
 0x1de   :  { %v430_v34 = vrot.slane %v429_v33, 2  ;;  %v421_v35 = vrot.slane %v420_v32, 1 }
 0x1e0   :  { %v431_v36 = vmax.f32 %v429_v33, %v430_v34  ;;  %v422_v38 = vmax.f32 %v420_v32, %v421_v35 }
 0x1e2   :  { %v432_v37 = vrot.slane %v431_v36, 1 }
 0x1e4   :  { %v433_v39 = vmax.f32 %v431_v36, %v432_v37 }
 0x1e6   :  { %v434_v40 = vsel %vm272_vm12, %v422_v38, %v433_v39 }
 0x1e7   :  { %v593_v41 = vpack.c.bf16 %v434_v40, %v434_v40 }
 0x1e9   :  { %826 = vmatprep.mubr.bf16.mxu1 %v593_v41 }
 0x1ea   :  { %827 = vmatmul.mubr.bf16.vlgmr.msra.gmra.mrb[8].mxu1 %v592_v42 }
 0x29c   :  { %v868_v43 = vpop.f32.mrb[4].mxu0 }
 0x29d   :  { %v1050_v44 = vpop.f32.mrb[5].mxu0 }
 0x29e   :  { %v871_v45 = vpop.f32.mrb[6].mxu0 }
 0x29f   :  { %v1051_v46 = vpop.f32.mrb[7].mxu0 }
 0x2bd   :  { %v981_v47 = vpop.f32.mrb[8].mxu1 }
 0x2be   :  { %v982_v49 = vpop.f32.mrb[9].mxu1 }
 0x2bf   :  { %v983_v50 = vadd.f32 %v982_v49, %v981_v47  ;;  %v984_v51 = vpop.f32.mrb[10].mxu1 }
 0x2c0   :  { %v985_v52 = vpop.f32.mrb[11].mxu1 }
 0x2c1   :  { %v829_v53 = vadd.f32 %v983_v50, %v924_v48 }
 0x2c3   :  { %v869_v54 = vadd.f32 %v868_v43, %v829_v53 }
 0x2c5   :  { %874 = vst [vmem:[#allocation11] sm:$0x3] %v869_v54 }
 0x2c6   :  { %1236 = shalt.err (!%p1233_p2)
}
 0x2c7   :  { %s1237_s8 = scalar_lea.hbm %s1501_s9, 32 }
 0x2c8   :  { %p1238_p3 = scmp.ne.s32.totalorder %s1501_s9, %s1237_s8  ;;  %p1241_p4 = scmp.lt.u32.totalorder %s1237_s8, %s1501_s9 }
 0x2ca   :  { %p1243_p5 = pnand %p1241_p4, %p1238_p3 }
 0x2cc   :  { %1246 = shalt.err (!%p1243_p5)
}
 0x2cd   :  { %884 = dma.vmem_to_hbm [thread:$0]  %s882_s13, 32, %s1501_s9, [#allocation4]  }
 0x2ce   :  { %1253 = dma.done.wait [#allocation4], 32  }
 0x2cf   :  { %1254 = vsyncadd [#allocation4], 4294967264 }
 0x2d0   :  { %888 = vsyncpa [#allocation3], 1 }
 0x2d1   :  { %889 = vsyncpa [#allocation6], 1 }
 0x2d2   :  { %890 = vsyncpa [#allocation9], 1 }
 0x2d3   :  { %891 = vsyncpa [#allocation4], 1 }

</bundles_post_ra>
